<compile_context>
chip_gen: v6e
topology: v6e:2x2x1
jax: 0.10.0
libtpu: 0.0.40
codegen_flags: <defaults>
</compile_context>

<pallas_src>
import functools

import jax
import jax.numpy as jnp
import numpy as np
from jax.experimental import pallas as pl
from jax.experimental.pallas import tpu as pltpu

_LANES = 128


def _fold_groups(row, k, fd):
    """Sum the k lane-groups of a (1, k*fd) row.

    Returns a (1, k*fd) row in which every group holds the per-feature total
    (replicated k times), so it broadcasts back over the packed layout for
    free.  Uses XLU lane rotations, which run in a separate bundle slot.
    """
    if k == 1:
        return row
    acc = row
    for a in range(1, k):
        acc = acc + pltpu.roll(row, shift=a * fd, axis=1)
    return acc


def _train_kernel(x_ref, rm_ref, rs_ref, out_ref, new_rm_ref, new_rs_ref,
                  *, eps, momentum, k, fd):
    x = x_ref[...]                                   # (Np, TF) f32, lane-dense
    nan_mask = jnp.isnan(x)
    x_zeroed = jnp.where(nan_mask, jnp.zeros_like(x), x)
    ones = jnp.logical_not(nan_mask).astype(jnp.float32)

    # nanmean over (bs, sl): sublane reduction + k-way lane-group fold.
    cnt = _fold_groups(jnp.sum(ones, axis=0, keepdims=True), k, fd)       # (1, TF)
    ssum = _fold_groups(jnp.sum(x_zeroed, axis=0, keepdims=True), k, fd)  # (1, TF)
    nan_mean = ssum / cnt

    # Two-pass variance (matches the reference; avoids E[x^2]-mean^2 cancellation).
    dev2 = jnp.where(nan_mask, jnp.zeros_like(x), (x - nan_mean) ** 2)
    ssq = _fold_groups(jnp.sum(dev2, axis=0, keepdims=True), k, fd)       # (1, TF)
    nan_std = jnp.sqrt(ssq / cnt)

    new_rm = momentum * nan_mean + (1.0 - momentum) * rm_ref[...]
    new_rs = momentum * nan_std + (1.0 - momentum) * rs_ref[...]
    new_rm_ref[...] = new_rm
    new_rs_ref[...] = new_rs

    # Hoisted divide: one EUP reciprocal (+ Newton refinement) per feature row,
    # then a single multiply per element.
    d = new_rs + eps
    inv = pl.reciprocal(d, approx=True)
    inv = inv * (2.0 - d * inv)          # one Newton step -> ~f32 accuracy
    out_ref[...] = (x - new_rm) * inv


def _eval_kernel(x_ref, rm_ref, rs_ref, out_ref, *, eps):
    d = rs_ref[...] + eps
    inv = pl.reciprocal(d, approx=True)
    inv = inv * (2.0 - d * inv)
    out_ref[...] = (x_ref[...] - rm_ref[...]) * inv


def _feature_tile(n_rows, width):
    """Pick a feature-tile width (multiple of 128 dividing `width`) such that
    double-buffered in+out tiles stay under ~24 MiB (safe on v7x's 64 MiB VMEM
    and v5e's small default scoped VMEM)."""
    if width % _LANES != 0:
        return width                         # small/ragged F: single full block
    budget = 6 * 1024 * 1024                 # bytes per x tile
    for tf in (2048, 1024, 512, 256, 128):
        if width % tf == 0 and n_rows * tf * 4 <= budget:
            return tf
    # TODO(synk): for huge N where even a 128-wide column block exceeds VMEM,
    # switch to a row-tiled two-pass structure (accumulate count/Σx/Σx² over an
    # "arbitrary" N grid, then a second normalize pass).
    return _LANES


def nan_batchnorm1d_naive(x, running_mean, running_std, *,
                          eps=1e-5, momentum=0.1, training=True):
    """Functional equivalent of NanBatchNorm1dNaive.forward (affine=False).

    x:            [bs, sl, fd]  float32
    running_mean: [1, 1, fd]    float32
    running_std:  [1, 1, fd]    float32
    Returns (output [bs, sl, fd], new_running_mean, new_running_std).
    """
    bs, sl, fd = x.shape
    n = bs * sl
    x2d = x.reshape(n, fd).astype(jnp.float32)
    rm = running_mean.reshape(1, fd).astype(jnp.float32)
    rs = running_std.reshape(1, fd).astype(jnp.float32)

    # Lane-dense packing: with fd < 128 only fd of the 128 lanes of every vreg
    # would carry data; fold k consecutive rows into the lane axis instead.
    k = 1
    if fd < _LANES and _LANES % fd == 0 and n % (_LANES // fd) == 0:
        k = _LANES // fd
    np_rows = n // k
    fw = k * fd
    xw = x2d.reshape(np_rows, fw)
    rmw = jnp.tile(rm, (1, k)) if k > 1 else rm
    rsw = jnp.tile(rs, (1, k)) if k > 1 else rs

    tf = fw if k > 1 else _feature_tile(np_rows, fw)
    grid = (fw // tf,)
    x_spec = pl.BlockSpec((np_rows, tf), lambda j: (0, j))
    row_spec = pl.BlockSpec((1, tf), lambda j: (0, j))

    tile_bytes = np_rows * tf * 4
    vmem_budget = int(min(max(4 * tile_bytes + (1 << 20), 16 * 1024 * 1024),
                          48 * 1024 * 1024))
    cparams = pltpu.CompilerParams(
        dimension_semantics=("parallel",),
        vmem_limit_bytes=vmem_budget,
    )

    if training:
        cost = pl.CostEstimate(flops=12 * n * fd, transcendentals=2 * fd,
                               bytes_accessed=8 * n * fd)
        out_w, new_rm_w, new_rs_w = pl.pallas_call(
            functools.partial(_train_kernel, eps=eps, momentum=momentum,
                              k=k, fd=fd),
            out_shape=(
                jax.ShapeDtypeStruct((np_rows, fw), jnp.float32),
                jax.ShapeDtypeStruct((1, fw), jnp.float32),
                jax.ShapeDtypeStruct((1, fw), jnp.float32),
            ),
            grid=grid,
            in_specs=[x_spec, row_spec, row_spec],
            out_specs=(x_spec, row_spec, row_spec),
            compiler_params=cparams,
            cost_estimate=cost,
        )(xw, rmw, rsw)
        new_rm = new_rm_w[:, :fd]        # unpack: every lane-group holds the stat
        new_rs = new_rs_w[:, :fd]
    else:
        cost = pl.CostEstimate(flops=2 * n * fd, transcendentals=fd,
                               bytes_accessed=8 * n * fd)
        out_w = pl.pallas_call(
            functools.partial(_eval_kernel, eps=eps),
            out_shape=jax.ShapeDtypeStruct((np_rows, fw), jnp.float32),
            grid=grid,
            in_specs=[x_spec, row_spec, row_spec],
            out_specs=x_spec,
            compiler_params=cparams,
            cost_estimate=cost,
        )(xw, rmw, rsw)
        new_rm, new_rs = rm, rs

    out = out_w.reshape(n, fd).reshape(bs, sl, fd)
    return out, new_rm.reshape(1, 1, fd), new_rs.reshape(1, 1, fd)


def _reference(x, rm, rs, *, eps=1e-5, momentum=0.1):
    """Pure-JAX reference mirroring the PyTorch forward (training mode)."""
    mask = jnp.isnan(x)
    cnt = jnp.sum((~mask).astype(jnp.float32), axis=(0, 1), keepdims=True)
    mean = jnp.sum(jnp.where(mask, 0.0, x), axis=(0, 1), keepdims=True) / cnt
    ssq = jnp.sum(jnp.where(mask, 0.0, (x - mean) ** 2), axis=(0, 1), keepdims=True)
    std = jnp.sqrt(ssq / cnt)
    new_rm = momentum * mean + (1.0 - momentum) * rm
    new_rs = momentum * std + (1.0 - momentum) * rs
    return (x - new_rm) / (new_rs + eps), new_rm, new_rs


if __name__ == "__main__":
    bs, sl, fd = 2, 8, 32
    key = jax.random.PRNGKey(0)
    kx, kn = jax.random.split(key)

    x = jax.random.normal(kx, (bs, sl, fd), dtype=jnp.float32) * 2.0 + 0.5
    # Sprinkle some NaNs to exercise the nan-aware statistics.
    nan_sites = jax.random.bernoulli(kn, p=0.1, shape=(bs, sl, fd))
    x = jnp.where(nan_sites, jnp.nan, x)

    # Buffers as registered in __init__ (deterministic init, no checkpoint).
    running_mean = jnp.zeros((1, 1, fd), dtype=jnp.float32)
    running_std = jnp.ones((1, 1, fd), dtype=jnp.float32)
    # affine=False -> no weight/bias; num_batches_tracked is unused in forward.

    out, new_rm, new_rs = nan_batchnorm1d_naive(
        x, running_mean, running_std, eps=1e-5, momentum=0.1, training=True)
    jax.block_until_ready(out)

    ref_out, ref_rm, ref_rs = _reference(x, running_mean, running_std)
    np.testing.assert_allclose(np.asarray(new_rm), np.asarray(ref_rm),
                               rtol=1e-5, atol=1e-6)
    np.testing.assert_allclose(np.asarray(new_rs), np.asarray(ref_rs),
                               rtol=1e-5, atol=1e-6)
    # Output has NaN exactly where the input had NaN; compare elsewhere.
    finite = ~np.isnan(np.asarray(x))
    np.testing.assert_allclose(np.asarray(out)[finite],
                               np.asarray(ref_out)[finite],
                               rtol=1e-5, atol=1e-5)
    assert np.array_equal(np.isnan(np.asarray(out)), ~finite)

    # Exercise the eval path too.
    out_eval, _, _ = nan_batchnorm1d_naive(
        x, new_rm, new_rs, eps=1e-5, momentum=0.1, training=False)
    jax.block_until_ready(out_eval)
    ref_eval = (x - new_rm) / (new_rs + 1e-5)
    np.testing.assert_allclose(np.asarray(out_eval)[finite],
                               np.asarray(ref_eval)[finite],
                               rtol=1e-5, atol=1e-5)

    print("KERNEL_OK")
</pallas_src>

<mosaic_0001>
module attributes {stable_mosaic.version = 11 : i64} {
  func.func @_train_kernel(%arg0: i32, %arg1: memref<4x128xf32, #tpu.memory_space<vmem>>, %arg2: memref<1x128xf32, #tpu.memory_space<vmem>>, %arg3: memref<1x128xf32, #tpu.memory_space<vmem>>, %arg4: memref<4x128xf32, #tpu.memory_space<vmem>>, %arg5: memref<1x128xf32, #tpu.memory_space<vmem>>, %arg6: memref<1x128xf32, #tpu.memory_space<vmem>>) attributes {dimension_semantics = [#tpu.dimension_semantics<parallel>], iteration_bounds = array<i64: 1>, scalar_prefetch = 0 : i64, scratch_operands = 0 : i64, tpu.core_type = #tpu.core_type<tc>, window_params = [{transform_indices = @transform_0, window_bounds = array<i64: 4, 128>}, {transform_indices = @transform_1, window_bounds = array<i64: 1, 128>}, {transform_indices = @transform_2, window_bounds = array<i64: 1, 128>}, {transform_indices = @transform_3, window_bounds = array<i64: 4, 128>}, {transform_indices = @transform_4, window_bounds = array<i64: 1, 128>}, {transform_indices = @transform_5, window_bounds = array<i64: 1, 128>}]} {
    %c0 = arith.constant 0 : index
    %c0_0 = arith.constant 0 : index
    %0 = vector.load %arg1[%c0, %c0_0] : memref<4x128xf32, #tpu.memory_space<vmem>>, vector<4x128xf32>
    %1 = arith.cmpf one, %0, %0 : vector<4x128xf32>
    %cst = arith.constant 0.000000e+00 : f32
    %2 = vector.broadcast %cst : f32 to vector<4x128xf32>
    %3 = arith.select %1, %2, %0 : vector<4x128xi1>, vector<4x128xf32>
    %cst_1 = arith.constant dense<true> : vector<4x128xi1>
    %4 = arith.xori %1, %cst_1 : vector<4x128xi1>
    %5 = arith.extui %4 : vector<4x128xi1> to vector<4x128xi32>
    %6 = arith.sitofp %5 : vector<4x128xi32> to vector<4x128xf32>
    %cst_2 = arith.constant dense<0.000000e+00> : vector<128xf32>
    %7 = vector.multi_reduction <add>, %6, %cst_2 [0] : vector<4x128xf32> to vector<128xf32>
    %8 = vector.shape_cast %7 : vector<128xf32> to vector<1x128xf32>
    %c32_i32 = arith.constant 32 : i32
    %9 = tpu.dynamic_rotate %8 by %c32_i32 dim 1 : vector<1x128xf32>, i32 -> vector<1x128xf32>
    %10 = arith.addf %8, %9 : vector<1x128xf32>
    %c64_i32 = arith.constant 64 : i32
    %11 = tpu.dynamic_rotate %8 by %c64_i32 dim 1 : vector<1x128xf32>, i32 -> vector<1x128xf32>
    %12 = arith.addf %10, %11 : vector<1x128xf32>
    %c96_i32 = arith.constant 96 : i32
    %13 = tpu.dynamic_rotate %8 by %c96_i32 dim 1 : vector<1x128xf32>, i32 -> vector<1x128xf32>
    %14 = arith.addf %12, %13 : vector<1x128xf32>
    %cst_3 = arith.constant dense<0.000000e+00> : vector<128xf32>
    %15 = vector.multi_reduction <add>, %3, %cst_3 [0] : vector<4x128xf32> to vector<128xf32>
    %16 = vector.shape_cast %15 : vector<128xf32> to vector<1x128xf32>
    %c32_i32_4 = arith.constant 32 : i32
    %17 = tpu.dynamic_rotate %16 by %c32_i32_4 dim 1 : vector<1x128xf32>, i32 -> vector<1x128xf32>
    %18 = arith.addf %16, %17 : vector<1x128xf32>
    %c64_i32_5 = arith.constant 64 : i32
    %19 = tpu.dynamic_rotate %16 by %c64_i32_5 dim 1 : vector<1x128xf32>, i32 -> vector<1x128xf32>
    %20 = arith.addf %18, %19 : vector<1x128xf32>
    %c96_i32_6 = arith.constant 96 : i32
    %21 = tpu.dynamic_rotate %16 by %c96_i32_6 dim 1 : vector<1x128xf32>, i32 -> vector<1x128xf32>
    %22 = arith.addf %20, %21 : vector<1x128xf32>
    %23 = arith.divf %22, %14 : vector<1x128xf32>
    %cst_7 = arith.constant 0.000000e+00 : f32
    %24 = vector.broadcast %cst_7 : f32 to vector<4x128xf32>
    %25 = vector.broadcast %23 : vector<1x128xf32> to vector<4x128xf32>
    %26 = arith.subf %0, %25 : vector<4x128xf32>
    %27 = arith.mulf %26, %26 : vector<4x128xf32>
    %28 = arith.select %1, %24, %27 : vector<4x128xi1>, vector<4x128xf32>
    %cst_8 = arith.constant dense<0.000000e+00> : vector<128xf32>
    %29 = vector.multi_reduction <add>, %28, %cst_8 [0] : vector<4x128xf32> to vector<128xf32>
    %30 = vector.shape_cast %29 : vector<128xf32> to vector<1x128xf32>
    %c32_i32_9 = arith.constant 32 : i32
    %31 = tpu.dynamic_rotate %30 by %c32_i32_9 dim 1 : vector<1x128xf32>, i32 -> vector<1x128xf32>
    %32 = arith.addf %30, %31 : vector<1x128xf32>
    %c64_i32_10 = arith.constant 64 : i32
    %33 = tpu.dynamic_rotate %30 by %c64_i32_10 dim 1 : vector<1x128xf32>, i32 -> vector<1x128xf32>
    %34 = arith.addf %32, %33 : vector<1x128xf32>
    %c96_i32_11 = arith.constant 96 : i32
    %35 = tpu.dynamic_rotate %30 by %c96_i32_11 dim 1 : vector<1x128xf32>, i32 -> vector<1x128xf32>
    %36 = arith.addf %34, %35 : vector<1x128xf32>
    %37 = arith.divf %36, %14 : vector<1x128xf32>
    %38 = math.sqrt %37 : vector<1x128xf32>
    %cst_12 = arith.constant 1.000000e-01 : f32
    %39 = vector.broadcast %cst_12 : f32 to vector<1x128xf32>
    %40 = arith.mulf %39, %23 : vector<1x128xf32>
    %c0_13 = arith.constant 0 : index
    %c0_14 = arith.constant 0 : index
    %41 = vector.load %arg2[%c0_13, %c0_14] : memref<1x128xf32, #tpu.memory_space<vmem>>, vector<1x128xf32>
    %cst_15 = arith.constant 0.899999976 : f32
    %42 = vector.broadcast %cst_15 : f32 to vector<1x128xf32>
    %43 = arith.mulf %42, %41 : vector<1x128xf32>
    %44 = arith.addf %40, %43 : vector<1x128xf32>
    %cst_16 = arith.constant 1.000000e-01 : f32
    %45 = vector.broadcast %cst_16 : f32 to vector<1x128xf32>
    %46 = arith.mulf %45, %38 : vector<1x128xf32>
    %c0_17 = arith.constant 0 : index
    %c0_18 = arith.constant 0 : index
    %47 = vector.load %arg3[%c0_17, %c0_18] : memref<1x128xf32, #tpu.memory_space<vmem>>, vector<1x128xf32>
    %cst_19 = arith.constant 0.899999976 : f32
    %48 = vector.broadcast %cst_19 : f32 to vector<1x128xf32>
    %49 = arith.mulf %48, %47 : vector<1x128xf32>
    %50 = arith.addf %46, %49 : vector<1x128xf32>
    %c0_20 = arith.constant 0 : index
    %c0_21 = arith.constant 0 : index
    %51 = vector.load %arg5[%c0_20, %c0_21] : memref<1x128xf32, #tpu.memory_space<vmem>>, vector<1x128xf32>
    tpu.vector_store %arg5[%c0_20, %c0_21], %44 {strides = array<i32>} : memref<1x128xf32, #tpu.memory_space<vmem>>, vector<1x128xf32>,
    %c0_22 = arith.constant 0 : index
    %c0_23 = arith.constant 0 : index
    %52 = vector.load %arg6[%c0_22, %c0_23] : memref<1x128xf32, #tpu.memory_space<vmem>>, vector<1x128xf32>
    tpu.vector_store %arg6[%c0_22, %c0_23], %50 {strides = array<i32>} : memref<1x128xf32, #tpu.memory_space<vmem>>, vector<1x128xf32>,
    %cst_24 = arith.constant 9.99999974E-6 : f32
    %53 = vector.broadcast %cst_24 : f32 to vector<1x128xf32>
    %54 = arith.addf %50, %53 : vector<1x128xf32>
    %55 = tpu.reciprocal %54 {approx = true} : vector<1x128xf32> -> vector<1x128xf32>
    %56 = arith.mulf %54, %55 : vector<1x128xf32>
    %cst_25 = arith.constant 2.000000e+00 : f32
    %57 = vector.broadcast %cst_25 : f32 to vector<1x128xf32>
    %58 = arith.subf %57, %56 : vector<1x128xf32>
    %59 = arith.mulf %55, %58 : vector<1x128xf32>
    %60 = vector.broadcast %44 : vector<1x128xf32> to vector<4x128xf32>
    %61 = arith.subf %0, %60 : vector<4x128xf32>
    %62 = vector.broadcast %59 : vector<1x128xf32> to vector<4x128xf32>
    %63 = arith.mulf %61, %62 : vector<4x128xf32>
    %c0_26 = arith.constant 0 : index
    %c0_27 = arith.constant 0 : index
    %64 = vector.load %arg4[%c0_26, %c0_27] : memref<4x128xf32, #tpu.memory_space<vmem>>, vector<4x128xf32>
    tpu.vector_store %arg4[%c0_26, %c0_27], %63 {strides = array<i32>} : memref<4x128xf32, #tpu.memory_space<vmem>>, vector<4x128xf32>,
    return
  }
  func.func @transform_0(%arg0: i32) -> (i32, i32) {
    %c0_i32 = arith.constant 0 : i32
    %c0_i32_0 = arith.constant 0 : i32
    return %c0_i32, %arg0 : i32, i32
  }
  func.func @transform_1(%arg0: i32) -> (i32, i32) {
    %c0_i32 = arith.constant 0 : i32
    %c0_i32_0 = arith.constant 0 : i32
    return %c0_i32, %arg0 : i32, i32
  }
  func.func @transform_2(%arg0: i32) -> (i32, i32) {
    %c0_i32 = arith.constant 0 : i32
    %c0_i32_0 = arith.constant 0 : i32
    return %c0_i32, %arg0 : i32, i32
  }
  func.func @transform_3(%arg0: i32) -> (i32, i32) {
    %c0_i32 = arith.constant 0 : i32
    %c0_i32_0 = arith.constant 0 : i32
    return %c0_i32, %arg0 : i32, i32
  }
  func.func @transform_4(%arg0: i32) -> (i32, i32) {
    %c0_i32 = arith.constant 0 : i32
    %c0_i32_0 = arith.constant 0 : i32
    return %c0_i32, %arg0 : i32, i32
  }
  func.func @transform_5(%arg0: i32) -> (i32, i32) {
    %c0_i32 = arith.constant 0 : i32
    %c0_i32_0 = arith.constant 0 : i32
    return %c0_i32, %arg0 : i32, i32
  }
}

</mosaic_0001>

<bundles_post_ra>
// kernel: tpu_custom_call.1
= control target key start
LH: loop header
LB: loop body
LE: loop exit
PB: predicated region body
PF: predicated region fallthrough
CT: control target
= control target key end

     0   :  { %11 = vsyncpa [#allocation3], 0  ;;  %s367_s0 = inlined_call_operand.hbm [shape: f32[4,128], index: 0, kind: input, shape index: {}]   ;;  %s368_s1 = inlined_call_operand.vmem [shape: f32[1,128], index: 1, kind: input, shape index: {}]   ;;  %s369_s2 = inlined_call_operand.vmem [shape: f32[1,128], index: 2, kind: input, shape index: {}]   ;;  %s370_s3 = inlined_call_operand.hbm [shape: f32[4,128], index: 3, kind: output, shape index: {0}]   ;;  %s371_s4 = inlined_call_operand.hbm [shape: f32[1,128], index: 4, kind: output, shape index: {1}]   ;;  %s372_s5 = inlined_call_operand.hbm [shape: f32[1,128], index: 5, kind: output, shape index: {2}]  }
   0x1   :  { %12 = vsyncpa [#allocation4], 0 }
   0x2   :  { %13 = vsyncpa [#allocation7], 0  ;;  %s273_s18 = smov [#allocation2]  }
   0x3   :  { %s20_s19 = sshll.u32 %s273_s18, 4  ;;  %s21_s19 = int_to_ptr.vmem [resolvable:$true] %s20_s19 }
   0x4   :  { %s195_s20 = scalar_lea.vmem %s21_s19, 64  ;;  %p200_p1 = scmp.lt.s32.totalorder %s21_s19, %s21_s19 }
   0x5   :  { %p196_p0 = scmp.ne.s32.totalorder %s21_s19, %s195_s20  ;;  %p201_p2 = scmp.lt.s32.totalorder %s195_s20, %s195_s20 }
   0x7   :  { %p202_p3 = por %p201_p2, %p200_p1 }
   0x9   :  { %p203_p4 = pnand %p202_p3, %p196_p0 }
   0xb   :  { %206 = shalt.err (!%p203_p4)
}
   0xc   :  { %23 = dma.hbm_to_vmem [thread:$0]  %s367_s0, 64, %s21_s19, [#allocation3]  }
   0xd   :  { %267 = dma.done.wait [#allocation3], 64  }
   0xe   :  { %268 = vsyncadd [#allocation3], 4294967232  ;;  %v315_v0 = vld [vmem:[#allocation2] sm:$0xf]  ;;  %vm37_vm1 = vcmask 1043456   ;;  %vm274_vm2 = vmmov 1   ;;  %v72_v27 = vlaneseq }
   0xf   :  { %vm32_vm0 = vcmp.ne.f32.partialorder %v315_v0, %v315_v0  ;;  %v275_v2 = vmov 0.0   ;;  %s276_s0 = smov 32   ;;  %s277_s23 = smov 96   ;;  %v104_v32 = vld [vmem:[%s368_s1] sm:$0x1] }
  0x10   :  { %vm34_vm3 = vmxor %vm32_vm0, %vm274_vm2  ;;  %v33_v1 = vsel %vm32_vm0, 0.0, %v315_v0  ;;  %s278_s24 = smov 64   ;;  %v73_v30 = vshrl.u32 %v72_v27, 7  ;;  %v105_v36 = vmul.f32 0.9, %v104_v32  ;;  %s279_s1 = smov [#allocation6]  }
  0x11   :  { %v171_v3 = vsel %vm34_vm3, 1.0, %v275_v2  ;;  %v54_v4 = vsel %vm37_vm1, %v33_v1, 0.0  ;;  %s145_s27 = sshll.u32 %s279_s1, 4  ;;  %s146_s27 = int_to_ptr.vmem [resolvable:$true] %s145_s27 }
  0x12   :  { %v38_v5 = vsel %vm37_vm1, %v171_v3, 0.0  ;;  %v55_v6 = vrot.slane %v54_v4, 4  ;;  %v337_v33 = vsub.s32 0, %v73_v30  ;;  %s207_s28 = scalar_lea.vmem %s146_s27, 16  ;;  %s211_s29 = scalar_lea.vmem %s146_s27, 32 }
  0x13   :  { %v39_v7 = vrot.slane %v38_v5, 4  ;;  %p208_p5 = scmp.ne.s32.totalorder %s146_s27, %s207_s28  ;;  %p212_p6 = scmp.lt.s32.totalorder %s146_s27, %s146_s27 }
  0x14   :  { %v56_v8 = vadd.f32 %v55_v6, %v54_v4  ;;  %p213_p7 = scmp.lt.s32.totalorder %s211_s29, %s207_s28 }
  0x15   :  { %v40_v9 = vadd.f32 %v39_v7, %v38_v5 }
  0x16   :  { %v57_v10 = vrot.slane %v56_v8, 2  ;;  %p214_p8 = por %p213_p7, %p212_p6 }
  0x17   :  { %v41_v11 = vrot.slane %v40_v9, 2 }
  0x18   :  { %v58_v12 = vadd.f32 %v57_v10, %v56_v8  ;;  %p215_p9 = pnand %p214_p8, %p208_p5 }
  0x19   :  { %v42_v13 = vadd.f32 %v41_v11, %v40_v9 }
  0x1a   :  { %v59_v15 = vrot.slane %v58_v12, 1 }
  0x1b   :  { %v43_v14 = vrot.slane %v42_v13, 1 }
  0x1c   :  { %v60_v17 = vadd.f32 %v59_v15, %v58_v12 }
  0x1d   :  { %v44_v16 = vadd.f32 %v43_v14, %v42_v13 }
  0x1f   :  { %45 = vrot.lane.b32.xlu0 %v44_v16, %s276_s0  ;;  %51 = vrot.lane.b32.xlu1 %v44_v16, %s277_s23 }
  0x23   :  { %48 = vrot.lane.b32.xlu0 %v44_v16, %s278_s24  ;;  %61 = vrot.lane.b32.xlu1 %v60_v17, %s276_s0 }
  0x27   :  { %64 = vrot.lane.b32.xlu0 %v60_v17, %s278_s24  ;;  %67 = vrot.lane.b32.xlu1 %v60_v17, %s277_s23 }
  0x91   :  { %v46_v18 = vpop.permute.xlu0 %45  ;;  %v52_v21 = vpop.permute.xlu1 %51 }
  0x92   :  { %v47_v19 = vadd.f32 %v46_v18, %v44_v16 }
  0x95   :  { %v49_v20 = vpop.permute.xlu0 %48  ;;  %v62_v24 = vpop.permute.xlu1 %61 }
  0x96   :  { %v50_v22 = vadd.f32 %v49_v20, %v47_v19  ;;  %v63_v25 = vadd.f32 %v62_v24, %v60_v17 }
  0x98   :  { %v53_v23 = vadd.f32 %v52_v21, %v50_v22 }
  0x99   :  { %v65_v26 = vpop.permute.xlu0 %64  ;;  %v68_v29 = vpop.permute.xlu1 %67 }
  0x9a   :  { %181 = vrcp.f32 %v53_v23  ;;  %v66_v28 = vadd.f32 %v65_v26, %v63_v25 }
  0x9c   :  { %v69_v31 = vadd.f32 %v68_v29, %v66_v28 }
  0xa7   :  { %v182_v34 = vpop.eup %181 }
  0xa8   :  { %v71_v35 = vmul.f32 %v182_v34, %v69_v31 }
  0xaa   :  { %v75_v37 = vrot.slane %v71_v35, %v337_v33  ;;  %v103_v38 = vmul.f32 0.1, %v71_v35 }
  0xac   :  { %v76_v39 = vsub.f32 %v315_v0, %v75_v37  ;;  %v341_v40 = vadd.f32 %v105_v36, %v103_v38 }
  0xae   :  { %v77_v41 = vmul.f32 %v76_v39, %v76_v39  ;;  %111 = vst [vmem:[#allocation6] sm:$0x1] %v341_v40 }
  0xb0   :  { %v78_v42 = vsel %vm32_vm0, 0.0, %v77_v41 }
  0xb1   :  { %v79_v43 = vsel %vm37_vm1, %v78_v42, 0.0 }
  0xb2   :  { %v80_v44 = vrot.slane %v79_v43, 4 }
  0xb4   :  { %v81_v45 = vadd.f32 %v80_v44, %v79_v43 }
  0xb6   :  { %v82_v46 = vrot.slane %v81_v45, 2 }
  0xb8   :  { %v83_v47 = vadd.f32 %v82_v46, %v81_v45 }
  0xba   :  { %v84_v48 = vrot.slane %v83_v47, 1 }
  0xbc   :  { %v85_v49 = vadd.f32 %v84_v48, %v83_v47 }
  0xbe   :  { %89 = vrot.lane.b32.xlu1 %v85_v49, %s278_s24  ;;  %86 = vrot.lane.b32.xlu0 %v85_v49, %s276_s0 }
  0xc2   :  { %92 = vrot.lane.b32.xlu0 %v85_v49, %s277_s23 }
  0xc3   :  { %218 = shalt.err (!%p215_p9)
}
  0xc4   :  { %148 = dma.vmem_to_hbm [thread:$0]  %s146_s27, 16, %s371_s4, [#allocation7]   ;;  %v108_v58 = vld [vmem:[%s369_s2] sm:$0x1] }
  0xc5   :  { %v109_v62 = vmul.f32 0.9, %v108_v58  ;;  %s280_s4 = smov [#allocation8]  }
  0xc6   :  { %s155_s9 = sshll.u32 %s280_s4, 4  ;;  %s156_s9 = int_to_ptr.vmem [resolvable:$true] %s155_s9 }
  0xc7   :  { %s227_s10 = scalar_lea.vmem %s156_s9, 16  ;;  %s231_s11 = scalar_lea.vmem %s156_s9, 32 }
  0xc8   :  { %p228_p10 = scmp.ne.s32.totalorder %s156_s9, %s227_s10  ;;  %p232_p11 = scmp.lt.s32.totalorder %s156_s9, %s156_s9 }
  0xc9   :  { %p233_p12 = scmp.lt.s32.totalorder %s231_s11, %s227_s10 }
  0xcb   :  { %p234_p13 = por %p233_p12, %p232_p11 }
  0xcd   :  { %p235_p0 = pnand %p234_p13, %p228_p10 }
 0x130   :  { %v87_v50 = vpop.permute.xlu0 %86  ;;  %v90_v52 = vpop.permute.xlu1 %89 }
 0x131   :  { %v88_v51 = vadd.f32 %v87_v50, %v85_v49 }
 0x133   :  { %v91_v53 = vadd.f32 %v90_v52, %v88_v51 }
 0x134   :  { %v93_v54 = vpop.permute.xlu0 %92 }
 0x135   :  { %v94_v55 = vadd.f32 %v93_v54, %v91_v53 }
 0x137   :  { %v95_v56 = vmul.f32 %v182_v34, %v94_v55 }
 0x139   :  { %183 = vrsqrt.f32 %v95_v56  ;;  %vm98_vm4 = vcmp.eq.f32.partialorder %v95_v56, inf  ;;  %v101_v60 = vand.u32 2147483648, %v95_v56  ;;  %vm100_vm5 = vcmp.eq.f32.partialorder %v95_v56, 0.0 }
 0x146   :  { %v184_v57 = vpop.eup %183 }
 0x147   :  { %v97_v59 = vmul.f32 %v184_v57, %v95_v56 }
 0x149   :  { %v99_v61 = vsel %vm98_vm4, %v95_v56, %v97_v59 }
 0x14a   :  { %v102_v63 = vsel %vm100_vm5, %v101_v60, %v99_v61 }
 0x14b   :  { %v107_v1 = vmul.f32 0.1, %v102_v63 }
 0x14d   :  { %v110_v2 = vadd.f32 %v109_v62, %v107_v1 }
 0x14f   :  { %v113_v3 = vadd.f32 1e-05, %v110_v2  ;;  %112 = vst [vmem:[#allocation8] sm:$0x1] %v110_v2 }
 0x150   :  { %238 = shalt.err (!%p235_p0)
}
 0x151   :  { %158 = dma.vmem_to_hbm [thread:$0]  %s156_s9, 16, %s372_s5, [#allocation7]   ;;  %185 = vrcp.f32 %v113_v3  ;;  %v121_v6 = vrot.slane %v341_v40, %v337_v33 }
 0x152   :  { %s281_s13 = smov [#allocation5]  }
 0x153   :  { %s135_s14 = sshll.u32 %s281_s13, 4  ;;  %v122_v9 = vsub.f32 %v315_v0, %v121_v6  ;;  %s136_s14 = int_to_ptr.vmem [resolvable:$true] %s135_s14 }
 0x154   :  { %s247_s15 = scalar_lea.vmem %s136_s14, 64  ;;  %p252_p2 = scmp.lt.s32.totalorder %s136_s14, %s136_s14 }
 0x155   :  { %p248_p1 = scmp.ne.s32.totalorder %s136_s14, %s247_s15  ;;  %p253_p3 = scmp.lt.s32.totalorder %s247_s15, %s247_s15 }
 0x157   :  { %p254_p4 = por %p253_p3, %p252_p2 }
 0x159   :  { %p255_p5 = pnand %p254_p4, %p248_p1 }
 0x15e   :  { %v186_v4 = vpop.eup %185 }
 0x15f   :  { %v115_v5 = vmul.f32 %v186_v4, %v113_v3 }
 0x161   :  { %v116_v7 = vsub.f32 2.0, %v115_v5 }
 0x163   :  { %v117_v8 = vmul.f32 %v186_v4, %v116_v7 }
 0x165   :  { %v126_v10 = vrot.slane %v117_v8, %v337_v33 }
 0x167   :  { %v127_v11 = vmul.f32 %v126_v10, %v122_v9 }
 0x169   :  { %128 = vst [vmem:[#allocation5] sm:$0xf] %v127_v11 }
 0x16a   :  { %258 = shalt.err (!%p255_p5)
}
 0x16b   :  { %138 = dma.vmem_to_hbm [thread:$0]  %s136_s14, 64, %s370_s3, [#allocation4]  }
 0x16c   :  { %269 = dma.done.wait [#allocation4], 64  }
 0x16d   :  { %270 = vsyncadd [#allocation4], 4294967232 }
 0x16e   :  { %271 = dma.done.wait [#allocation7], 32  }
 0x16f   :  { %272 = vsyncadd [#allocation7], 4294967264 }
 0x170   :  { %168 = vsyncpa [#allocation3], 1 }
 0x171   :  { %169 = vsyncpa [#allocation4], 1 }
 0x172   :  { %170 = vsyncpa [#allocation7], 1 }

</bundles_post_ra>
